<compile_context>
chip_gen: v7x
topology: tpu7x:2x2x1
jax: 0.10.0
libtpu: 0.0.40
codegen_flags: <defaults>
</compile_context>

<pallas_src>
import functools

import jax
import jax.numpy as jnp
from jax import lax
from jax.experimental import pallas as pl
from jax.experimental.pallas import tpu as pltpu

LANES = 128  # TPU lane width; padded output-column count of the fused output


def _stable_softplus(x):
    # single-branch numerically-stable softplus: 1 exp + 1 log1p per element.
    return jnp.maximum(x, 0.0) + jnp.log1p(jnp.exp(-jnp.abs(x)))


def mlp_encoder_kernel(x_ref, w_ref, b_ref, out_ref, *,
                       input_dim, features, output_dim, min_std):
    # Packed slabs (one DMA each; VMEM-resident across the whole grid):
    #   w_ref: (input_dim + 2*features, 128) bf16
    #     rows [0, input_dim)                    cols [0, features) -> w0
    #     rows [input_dim, input_dim+features)   cols [0, features) -> w1
    #     rows [input_dim+features, end)         cols [0, 128)      -> wo (zero-padded)
    #   b_ref: (3, 128) f32, rows = b0 / b1 / bo (zero-padded)
    W = w_ref[...]
    B = b_ref[...]
    r0 = input_dim
    r1 = input_dim + features
    w0 = W[0:r0, 0:features]        # static value slices; row offsets are
    w1 = W[r0:r1, 0:features]       # multiples of 16 (bf16 sublane packing)
    wo = W[r1:, :]
    b0 = B[0:1, 0:features]
    b1 = B[1:2, 0:features]
    bo = B[2:3, :]

    # hidden layers: bf16 MXU matmuls, f32 accumulation; f32 bias/ReLU (VPU)
    h = jnp.dot(x_ref[...].astype(jnp.bfloat16), w0,
                preferred_element_type=jnp.float32)
    h = jnp.maximum(h + b0, 0.0)
    h = jnp.dot(h.astype(jnp.bfloat16), w1,
                preferred_element_type=jnp.float32)
    h = jnp.maximum(h + b1, 0.0)

    # output layer padded to 128 lanes -> single lane-dense unmasked store
    out = jnp.dot(h.astype(jnp.bfloat16), wo,
                  preferred_element_type=jnp.float32) + bo

    # torch.chunk + softplus fused via a lane mask: cols < output_dim are mu
    # (pass-through), cols >= output_dim are std-half / zero-pad (softplus +
    # min_std). The tile is a few vregs, so full-width masking is free.
    col = lax.broadcasted_iota(jnp.int32, out.shape, 1)
    out = jnp.where(col >= output_dim, _stable_softplus(out) + min_std, out)

    out_ref[...] = out.astype(out_ref.dtype)


def mlp_encoder_forward(x, w_slab, b_slab, *, input_dim, features, output_dim,
                        min_std=0.01, block_batch=128):
    """MLPEncoder forward: one gridded Pallas call over batch tiles; the mu/std
    split (and lane-padding strip) is a free slice on the fused output."""
    batch = x.shape[0]
    nblk = pl.cdiv(batch, block_batch)
    pb = nblk * block_batch
    if pb != batch:
        x = jnp.pad(x, ((0, pb - batch), (0, 0)))

    kernel = functools.partial(mlp_encoder_kernel, input_dim=input_dim,
                               features=features, output_dim=output_dim,
                               min_std=min_std)

    w_rows = w_slab.shape[0]
    flops = 2 * pb * (input_dim * features + features * features + features * LANES)
    transcendentals = 2 * pb * LANES  # exp + log1p per fused-output element
    bytes_accessed = (pb * input_dim * 4 + w_slab.size * 2
                      + b_slab.size * 4 + pb * LANES * 4)

    out = pl.pallas_call(
        kernel,
        out_shape=jax.ShapeDtypeStruct((pb, LANES), jnp.float32),
        grid=(nblk,),
        in_specs=[
            pl.BlockSpec((block_batch, input_dim), lambda i: (i, 0)),
            pl.BlockSpec((w_rows, LANES), lambda i: (0, 0)),  # weights VMEM-resident
            pl.BlockSpec((3, LANES), lambda i: (0, 0)),       # biases VMEM-resident
        ],
        out_specs=pl.BlockSpec((block_batch, LANES), lambda i: (i, 0)),
        compiler_params=pltpu.CompilerParams(
            dimension_semantics=("parallel",)),   # 2x on v7x megacore, no-op on v5e/v6e
        cost_estimate=pl.CostEstimate(flops=flops,
                                      transcendentals=transcendentals,
                                      bytes_accessed=bytes_accessed),
    )(x, w_slab, b_slab)

    out = out[:batch]
    mu = out[:, :output_dim]
    std = out[:, output_dim:2 * output_dim]
    return mu, std


def init_raw_params(key, input_dim, features, output_dim):
    """Deterministic synthetic params (shapes match the torch module).
    Weights bf16 (MXU-native), biases f32."""
    _output_dim = 2 * output_dim  # dist_type == 'gauss'
    ks = jax.random.split(key, 6)
    scale = 0.1
    w0 = (scale * jax.random.normal(ks[0], (input_dim, features), jnp.float32)
          ).astype(jnp.bfloat16)
    b0 = scale * jax.random.normal(ks[1], (features,), jnp.float32)
    w1 = (scale * jax.random.normal(ks[2], (features, features), jnp.float32)
          ).astype(jnp.bfloat16)
    b1 = scale * jax.random.normal(ks[3], (features,), jnp.float32)
    wo = (scale * jax.random.normal(ks[4], (features, _output_dim), jnp.float32)
          ).astype(jnp.bfloat16)
    bo = scale * jax.random.normal(ks[5], (_output_dim,), jnp.float32)
    return (w0, b0, w1, b1, wo, bo)


def pack_params(raw, *, input_dim, features, output_dim):
    """Pack the 6 parameter arrays into one bf16 weight slab + one f32 bias slab."""
    w0, b0, w1, b1, wo, bo = raw
    out_cols = 2 * output_dim
    rows = input_dim + 2 * features
    W = jnp.zeros((rows, LANES), jnp.bfloat16)
    W = W.at[0:input_dim, 0:features].set(w0)
    W = W.at[input_dim:input_dim + features, 0:features].set(w1)
    W = W.at[input_dim + features:, 0:out_cols].set(wo)
    B = jnp.zeros((3, LANES), jnp.float32)
    B = B.at[0, 0:features].set(b0)
    B = B.at[1, 0:features].set(b1)
    B = B.at[2, 0:out_cols].set(bo)
    return W, B


def reference_forward_bf16(x, raw, *, output_dim, min_std=0.01):
    """Pure-JAX reference mirroring the kernel's bf16-operand / f32-accumulate recipe."""
    w0, b0, w1, b1, wo, bo = raw
    h = jnp.maximum(jnp.dot(x.astype(jnp.bfloat16), w0,
                            preferred_element_type=jnp.float32) + b0, 0.0)
    h = jnp.maximum(jnp.dot(h.astype(jnp.bfloat16), w1,
                            preferred_element_type=jnp.float32) + b1, 0.0)
    out = jnp.dot(h.astype(jnp.bfloat16), wo,
                  preferred_element_type=jnp.float32) + bo
    mu = out[:, :output_dim]
    std = jax.nn.softplus(out[:, output_dim:]) + min_std
    return mu, std


def reference_forward_f32(x, raw, *, output_dim, min_std=0.01):
    """Full-f32 reference (sanity check on bf16 rounding error)."""
    w0, b0, w1, b1, wo, bo = raw
    h = jnp.maximum(x @ w0.astype(jnp.float32) + b0, 0.0)
    h = jnp.maximum(h @ w1.astype(jnp.float32) + b1, 0.0)
    out = h @ wo.astype(jnp.float32) + bo
    mu = out[:, :output_dim]
    std = jax.nn.softplus(out[:, output_dim:]) + min_std
    return mu, std


if __name__ == "__main__":
    # small shapes consistent with the module; batch chosen as a couple of
    # 128-row tiles so the grid/residency pattern is actually exercised.
    batch, input_dim, features, output_dim = 256, 16, 32, 8
    min_std = 0.01

    key = jax.random.PRNGKey(0)
    k_x, k_p = jax.random.split(key)
    x = jax.random.normal(k_x, (batch, input_dim), jnp.float32)
    raw = init_raw_params(k_p, input_dim, features, output_dim)
    w_slab, b_slab = pack_params(raw, input_dim=input_dim, features=features,
                                 output_dim=output_dim)

    fwd = jax.jit(functools.partial(
        mlp_encoder_forward, input_dim=input_dim, features=features,
        output_dim=output_dim, min_std=min_std, block_batch=128))
    mu, std = fwd(x, w_slab, b_slab)
    jax.block_until_ready((mu, std))

    # correctness: exact-recipe (bf16 matmul) reference, tight tolerance
    mu_ref, std_ref = reference_forward_bf16(x, raw, output_dim=output_dim,
                                             min_std=min_std)
    assert mu.shape == (batch, output_dim) and std.shape == (batch, output_dim)
    assert jnp.allclose(mu, mu_ref, atol=5e-3, rtol=5e-3)
    assert jnp.allclose(std, std_ref, atol=5e-3, rtol=5e-3)

    # sanity: within bf16 rounding of the full-f32 math
    mu_f32, std_f32 = reference_forward_f32(x, raw, output_dim=output_dim,
                                            min_std=min_std)
    assert jnp.allclose(mu, mu_f32, atol=5e-2, rtol=5e-2)
    assert jnp.allclose(std, std_f32, atol=5e-2, rtol=5e-2)
    assert bool(jnp.all(std > 0.0))

    # TODO(synk): Normal(mu, std) distribution object / 'flow' RealNVP bijector have no
    # Pallas equivalent; kernel returns the (mu, std) parameter tensors instead.
    print("KERNEL_OK")
</pallas_src>

<mosaic_0001>
module attributes {stable_mosaic.version = 11 : i64} {
  func.func @mlp_encoder_kernel(%arg0: i32, %arg1: memref<128x16xf32, #tpu.memory_space<vmem>>, %arg2: memref<80x128xbf16, #tpu.memory_space<vmem>>, %arg3: memref<3x128xf32, #tpu.memory_space<vmem>>, %arg4: memref<128x128xf32, #tpu.memory_space<vmem>>) attributes {dimension_semantics = [#tpu.dimension_semantics<parallel>], iteration_bounds = array<i64: 2>, scalar_prefetch = 0 : i64, scratch_operands = 0 : i64, tpu.core_type = #tpu.core_type<tc>, window_params = [{transform_indices = @transform_0, window_bounds = array<i64: 128, 16>}, {pipeline_mode = #tpu.pipeline_mode<synchronous>, transform_indices = @transform_1, window_bounds = array<i64: 80, 128>}, {pipeline_mode = #tpu.pipeline_mode<synchronous>, transform_indices = @transform_2, window_bounds = array<i64: 3, 128>}, {transform_indices = @transform_3, window_bounds = array<i64: 128, 128>}]} {
    %c0 = arith.constant 0 : index
    %c0_0 = arith.constant 0 : index
    %0 = vector.load %arg2[%c0, %c0_0] : memref<80x128xbf16, #tpu.memory_space<vmem>>, vector<80x128xbf16>
    %c0_1 = arith.constant 0 : index
    %c0_2 = arith.constant 0 : index
    %1 = vector.load %arg3[%c0_1, %c0_2] : memref<3x128xf32, #tpu.memory_space<vmem>>, vector<3x128xf32>
    %2 = vector.extract_strided_slice %0 {offsets = [0, 0], sizes = [16, 32], strides = [1, 1]} : vector<80x128xbf16> to vector<16x32xbf16>
    %3 = vector.extract_strided_slice %0 {offsets = [16, 0], sizes = [32, 32], strides = [1, 1]} : vector<80x128xbf16> to vector<32x32xbf16>
    %4 = vector.extract_strided_slice %0 {offsets = [48, 0], sizes = [32, 128], strides = [1, 1]} : vector<80x128xbf16> to vector<32x128xbf16>
    %5 = vector.extract_strided_slice %1 {offsets = [0, 0], sizes = [1, 32], strides = [1, 1]} : vector<3x128xf32> to vector<1x32xf32>
    %6 = vector.extract_strided_slice %1 {offsets = [1, 0], sizes = [1, 32], strides = [1, 1]} : vector<3x128xf32> to vector<1x32xf32>
    %7 = vector.extract_strided_slice %1 {offsets = [2, 0], sizes = [1, 128], strides = [1, 1]} : vector<3x128xf32> to vector<1x128xf32>
    %c0_3 = arith.constant 0 : index
    %c0_4 = arith.constant 0 : index
    %8 = vector.load %arg1[%c0_3, %c0_4] : memref<128x16xf32, #tpu.memory_space<vmem>>, vector<128x16xf32>
    %9 = arith.truncf %8 : vector<128x16xf32> to vector<128x16xbf16>
    %cst = arith.constant dense<0.000000e+00> : vector<128x32xf32>
    %10 = tpu.matmul %9, %2, %cst {dimension_numbers = #tpu.dot_dimension_numbers<[1], [0], [0], [1], [0, 0, 1, 1], [], []>} : vector<128x16xbf16>, vector<16x32xbf16>, vector<128x32xf32> -> vector<128x32xf32>
    %11 = vector.broadcast %5 : vector<1x32xf32> to vector<128x32xf32>
    %12 = arith.addf %10, %11 : vector<128x32xf32>
    %cst_5 = arith.constant 0.000000e+00 : f32
    %13 = vector.broadcast %cst_5 : f32 to vector<128x32xf32>
    %14 = arith.maximumf %12, %13 : vector<128x32xf32>
    %15 = arith.truncf %14 : vector<128x32xf32> to vector<128x32xbf16>
    %cst_6 = arith.constant dense<0.000000e+00> : vector<128x32xf32>
    %16 = tpu.matmul %15, %3, %cst_6 {dimension_numbers = #tpu.dot_dimension_numbers<[1], [0], [0], [1], [0, 0, 1, 1], [], []>} : vector<128x32xbf16>, vector<32x32xbf16>, vector<128x32xf32> -> vector<128x32xf32>
    %17 = vector.broadcast %6 : vector<1x32xf32> to vector<128x32xf32>
    %18 = arith.addf %16, %17 : vector<128x32xf32>
    %cst_7 = arith.constant 0.000000e+00 : f32
    %19 = vector.broadcast %cst_7 : f32 to vector<128x32xf32>
    %20 = arith.maximumf %18, %19 : vector<128x32xf32>
    %21 = arith.truncf %20 : vector<128x32xf32> to vector<128x32xbf16>
    %cst_8 = arith.constant dense<0.000000e+00> : vector<128x128xf32>
    %22 = tpu.matmul %21, %4, %cst_8 {dimension_numbers = #tpu.dot_dimension_numbers<[1], [0], [0], [1], [0, 0, 1, 1], [], []>} : vector<128x32xbf16>, vector<32x128xbf16>, vector<128x128xf32> -> vector<128x128xf32>
    %23 = vector.broadcast %7 : vector<1x128xf32> to vector<128x128xf32>
    %24 = arith.addf %22, %23 : vector<128x128xf32>
    %25 = tpu.iota {dimensions = array<i32: 1>} : vector<128x128xi32>
    %c8_i32 = arith.constant 8 : i32
    %26 = vector.broadcast %c8_i32 : i32 to vector<128x128xi32>
    %27 = arith.cmpi sge, %25, %26 : vector<128x128xi32>
    %cst_9 = arith.constant 0.000000e+00 : f32
    %28 = vector.broadcast %cst_9 : f32 to vector<128x128xf32>
    %29 = arith.maximumf %24, %28 : vector<128x128xf32>
    %30 = math.absf %24 : vector<128x128xf32>
    %cst_10 = arith.constant 0.000000e+00 : f32
    %31 = vector.broadcast %cst_10 : f32 to vector<128x128xf32>
    %32 = arith.subf %31, %30 : vector<128x128xf32>
    %33 = math.exp %32 : vector<128x128xf32>
    %34 = math.log1p %33 : vector<128x128xf32>
    %35 = arith.addf %29, %34 : vector<128x128xf32>
    %cst_11 = arith.constant 0.00999999977 : f32
    %36 = vector.broadcast %cst_11 : f32 to vector<128x128xf32>
    %37 = arith.addf %35, %36 : vector<128x128xf32>
    %38 = arith.select %27, %37, %24 : vector<128x128xi1>, vector<128x128xf32>
    %c0_12 = arith.constant 0 : index
    %c0_13 = arith.constant 0 : index
    %39 = vector.load %arg4[%c0_12, %c0_13] : memref<128x128xf32, #tpu.memory_space<vmem>>, vector<128x128xf32>
    tpu.vector_store %arg4[%c0_12, %c0_13], %38 {strides = array<i32>} : memref<128x128xf32, #tpu.memory_space<vmem>>, vector<128x128xf32>,
    return
  }
  func.func @transform_0(%arg0: i32) -> (i32, i32) {
    %c0_i32 = arith.constant 0 : i32
    %c0_i32_0 = arith.constant 0 : i32
    return %arg0, %c0_i32 : i32, i32
  }
  func.func @transform_1(%arg0: i32) -> (i32, i32) {
    %c0_i32 = arith.constant 0 : i32
    %c0_i32_0 = arith.constant 0 : i32
    %c0_i32_1 = arith.constant 0 : i32
    return %c0_i32, %c0_i32_0 : i32, i32
  }
  func.func @transform_2(%arg0: i32) -> (i32, i32) {
    %c0_i32 = arith.constant 0 : i32
    %c0_i32_0 = arith.constant 0 : i32
    %c0_i32_1 = arith.constant 0 : i32
    return %c0_i32, %c0_i32_0 : i32, i32
  }
  func.func @transform_3(%arg0: i32) -> (i32, i32) {
    %c0_i32 = arith.constant 0 : i32
    %c0_i32_0 = arith.constant 0 : i32
    return %arg0, %c0_i32 : i32, i32
  }
}

</mosaic_0001>

<bundles_post_ra>
// kernel: mlp_encoder_forward.1
= control target key start
LH: loop header
LB: loop body
LE: loop exit
PB: predicated region body
PF: predicated region fallthrough
CT: control target
= control target key end

     0   :  { %s1246_s12 = smov 0   ;;  %s1578_s0 = inlined_call_operand.vmem [shape: f32[256,16], index: 0, kind: input, shape index: {}]   ;;  %s1579_s1 = inlined_call_operand.vmem [shape: bf16[80,128], index: 1, kind: input, shape index: {}]   ;;  %s1580_s2 = inlined_call_operand.vmem [shape: f32[3,128], index: 2, kind: input, shape index: {}]   ;;  %s1581_s3 = inlined_call_operand.vmem [shape: f32[256,128], index: 3, kind: output, shape index: {}]  }
   0x1 LB: > { %s1012_s13 = sadd.s32 4294967295, %s1224_s12   ;;  %p1016_p0 = scmp.ge.s32.totalorder %s1224_s12, 1  ;;  %s1224_s12 = sphi %s1246_s12, %s13_s12  }
   0x2   : > { %p138_p1 = scmp.lt.s32.totalorder %s1224_s12, 3 }
   0x4   : > { %p139_p2 = pnand %p1016_p0, %p138_p1 }
   0x5   : > { %v1149_v0 = vld [vmem:[%s1579_s1] sm:$0xff] (!%p139_p2)   ;;  %s1017_s16 = sshll.u32 (!%p139_p2), %s1012_s13, 4  ;;  %v1150_v1 = vld [vmem:[%s1579_s1 + $0x8] sm:$0xff] (!%p139_p2)   ;;  %vm220_vm0 = vcmask (!%p139_p2), 130048   ;;  %v1151_v26 = vld [vmem:[%s1579_s1 + $0x10] sm:$0xff] (!%p139_p2)   ;;  %v210_v28 = vlaneseq (!%p139_p2)  ;;  %vm382_vm1 = vcmask (!%p139_p2), 261120  }
   0x6   : > { %142 = sbr.rel (%p139_p2) target bundleno = 770 (0x302), region = 32  ;;  %p163_p3 = scmp.lt.s32.totalorder (!%p139_p2), %s1017_s16, 31  ;;  %1081 = vmatprep.subr.bf16.mxu0 (!%p139_p2), %v1149_v0  ;;  %1139 = vmatprep.subr.bf16.mxu1 (!%p139_p2), %v1149_v0  ;;  %v1152_v27 = vld [vmem:[%s1579_s1 + $0x18] sm:$0xff] (!%p139_p2)   ;;  %v1289_v31 = vld [vmem:[%s1580_s2] sm:$0x7] (!%p139_p2) }
   0x7   : > { %1082 = vmatpush3.bf16.msra.mxu0 (!%p139_p2), %v1149_v0  ;;  %1140 = vmatpush3.bf16.msra.mxu1 (!%p139_p2), %v1149_v0  ;;  %v1283_v29 = vshrl.u32 (!%p139_p2), %v210_v28, 7 }
   0x8   : > { %1099 = vmatprep.subr.bf16.mxu1 (!%p139_p2), %v1150_v1  ;;  %1119 = vmatprep.subr.bf16.mxu0 (!%p139_p2), %v1152_v27 }
   0x9   : > { %v212_v30 = vsub.s32 (!%p139_p2), 0, %v1283_v29 }
   0xb   : > { %v213_v32 = vrot.slane (!%p139_p2), %v1289_v31, %v212_v30 }
   0xd   : > { %s1599_s16 = smov (!%p163_p3, %s1017_s16), 31 }
   0xe   : > { %s1018_s19 = sshll.u32 %s1599_s16, 3 }
   0xf   : > { %s166_s22 = scalar_lea.vmem %s1578_s0, %s1018_s19  ;;  %s1428_s6 = scalar_lea.vmem %s1581_s3, %s1018_s19 }
  0x10   : > { %v186_v2 = vld [vmem:[%s166_s22] sm:$0xff]  ;;  %v187_v3 = vld [vmem:[%s166_s22 + $0x8] sm:$0xff]  ;;  %v188_v4 = vld [vmem:[%s166_s22 + $0x10] sm:$0xff] }
  0x11   : > { %v202_v5 = vpack.c.bf16 %v187_v3, %v186_v2  ;;  %v189_v6 = vld [vmem:[%s166_s22 + $0x18] sm:$0xff]  ;;  %v190_v7 = vld [vmem:[%s166_s22 + $0x20] sm:$0xff]  ;;  %v191_v8 = vld [vmem:[%s166_s22 + $0x28] sm:$0xff] }
  0x12   : > { %v203_v9 = vpack.c.bf16 %v189_v6, %v188_v4  ;;  %v204_v10 = vpack.c.bf16 %v191_v8, %v190_v7  ;;  %v194_v11 = vld [vmem:[%s166_s22 + $0x40] sm:$0xff]  ;;  %v195_v12 = vld [vmem:[%s166_s22 + $0x48] sm:$0xff]  ;;  %v196_v13 = vld [vmem:[%s166_s22 + $0x50] sm:$0xff] }
  0x13   : > { %1083 = vmatprep.mubr.msk.bf16.mxu0 %vm220_vm0, %v202_v5  ;;  %v197_v14 = vld [vmem:[%s166_s22 + $0x58] sm:$0xff]  ;;  %v206_v15 = vpack.c.bf16 %v195_v12, %v194_v11  ;;  %v198_v17 = vld [vmem:[%s166_s22 + $0x60] sm:$0xff]  ;;  %v199_v18 = vld [vmem:[%s166_s22 + $0x68] sm:$0xff] }
  0x14   : > { %1084 = vmatmul.mubr.msk.bf16.vlgmr.msra.gmra.mrb[0].mxu0 %vm220_vm0, %v203_v9  ;;  %v207_v16 = vpack.c.bf16 %v197_v14, %v196_v13  ;;  %v192_v19 = vld [vmem:[%s166_s22 + $0x30] sm:$0xff]  ;;  %v193_v20 = vld [vmem:[%s166_s22 + $0x38] sm:$0xff]  ;;  %v208_v21 = vpack.c.bf16 %v199_v18, %v198_v17 }
  0x15   : > { %1087 = vmatprep.mubr.msk.bf16.mxu0 %vm220_vm0, %v204_v10  ;;  %1091 = vmatprep.mubr.msk.bf16.mxu1 %vm220_vm0, %v206_v15  ;;  %v205_v22 = vpack.c.bf16 %v193_v20, %v192_v19  ;;  %v200_v23 = vld [vmem:[%s166_s22 + $0x70] sm:$0xff]  ;;  %v201_v24 = vld [vmem:[%s166_s22 + $0x78] sm:$0xff] }
  0x16   : > { %1092 = vmatmul.mubr.msk.bf16.vlgmr.msra.gmra.mrb[0].mxu1 %vm220_vm0, %v207_v16  ;;  %v209_v25 = vpack.c.bf16 %v201_v24, %v200_v23  ;;  %1120 = vmatpush3.bf16.msra.mxu0 %v1152_v27 }
  0x17   : > { %1095 = vmatprep.mubr.msk.bf16.mxu1 %vm220_vm0, %v208_v21  ;;  %1100 = vmatpush3.bf16.msra.mxu1 %v1150_v1 }
  0x18   : > { %1101 = vmatprep.subr.bf16.mxu1 %v1151_v26 }
  0x1b   : > { %1102 = vmatpush3.bf16.msra.mxu1 %v1151_v26  ;;  %v368_v26 = vsub.s32 1, %v1283_v29 }
  0x1c   : > { %1088 = vmatmul.mubr.msk.bf16.gmra.mrb[4].mxu0 %vm220_vm0, %v205_v22 }
  0x1d   : > { %v369_v27 = vrot.slane %v1289_v31, %v368_v26 }
  0x1e   : > { %1096 = vmatmul.mubr.msk.bf16.gmra.mrb[4].mxu1 %vm220_vm0, %v209_v25  ;;  %v1153_v25 = vld [vmem:[%s1579_s1 + $0x20] sm:$0xff]  }
  0x1f   : > { %1121 = vmatprep.subr.bf16.mxu0 %v1153_v25 }
  0x20   : > { %1122 = vmatpush3.bf16.msra.mxu0 %v1153_v25 }
  0xe7   : > { %v1085_v33 = vpop.f32.mrb[0].mxu0 }
  0xe8   : > { %v288_v34 = vadd.f32 %v1085_v33, %v213_v32  ;;  %v279_v35 = vpop.f32.mrb[1].mxu0 }
  0xe9   : > { %v280_v36 = vadd.f32 %v279_v35, %v213_v32  ;;  %v1086_v37 = vpop.f32.mrb[2].mxu0  ;;  %v1093_v40 = vpop.f32.mrb[0].mxu1 }
  0xea   : > { %v291_v38 = vadd.f32 %v1086_v37, %v213_v32  ;;  %v282_v39 = vpop.f32.mrb[3].mxu0  ;;  %v320_v42 = vadd.f32 %v1093_v40, %v213_v32  ;;  %v311_v43 = vpop.f32.mrb[1].mxu1  ;;  %v344_v44 = vmax.f32 %v288_v34, 0.0 }
  0xeb   : > { %v283_v41 = vadd.f32 %v282_v39, %v213_v32  ;;  %v312_v46 = vadd.f32 %v311_v43, %v213_v32  ;;  %v1094_v47 = vpop.f32.mrb[2].mxu1  ;;  %v342_v48 = vmax.f32 %v280_v36, 0.0 }
  0xec   : > { %v345_v45 = vmax.f32 %v291_v38, 0.0  ;;  %v352_v50 = vmax.f32 %v320_v42, 0.0  ;;  %v323_v51 = vadd.f32 %v1094_v47, %v213_v32  ;;  %v314_v52 = vpop.f32.mrb[3].mxu1 }
  0xed   : > { %v343_v49 = vmax.f32 %v283_v41, 0.0  ;;  %v350_v54 = vmax.f32 %v312_v46, 0.0  ;;  %v315_v55 = vadd.f32 %v314_v52, %v213_v32 }
  0xee   : > { %v359_v53 = vpack.c.bf16 %v345_v45, %v344_v44  ;;  %v353_v58 = vmax.f32 %v323_v51, 0.0 }
  0xef   : > { %v358_v56 = vpack.c.bf16 %v343_v49, %v342_v48  ;;  %v1089_v57 = vpop.f32.mrb[4].mxu0  ;;  %v351_v61 = vmax.f32 %v315_v55, 0.0 }
  0xf0   : > { %v304_v59 = vadd.f32 %v1089_v57, %v213_v32  ;;  %v295_v60 = vpop.f32.mrb[5].mxu0  ;;  %v363_v0 = vpack.c.bf16 %v353_v58, %v352_v50 }
  0xf1   : > { %v296_v62 = vadd.f32 %v295_v60, %v213_v32  ;;  %v1090_v63 = vpop.f32.mrb[6].mxu0  ;;  %1103 = vmatprep.mubr.msk.bf16.mxu1 %vm382_vm1, %v358_v56  ;;  %v362_v3 = vpack.c.bf16 %v351_v61, %v350_v54  ;;  %v1097_v4 = vpop.f32.mrb[4].mxu1 }
  0xf2   : > { %v307_v1 = vadd.f32 %v1090_v63, %v213_v32  ;;  %v298_v2 = vpop.f32.mrb[7].mxu0  ;;  %1104 = vmatmul.mubr.msk.bf16.vlgmr.msra.gmra.mrb[8].mxu1 %vm382_vm1, %v359_v53  ;;  %v336_v6 = vadd.f32 %v1097_v4, %v213_v32  ;;  %v327_v7 = vpop.f32.mrb[5].mxu1  ;;  %v348_v8 = vmax.f32 %v304_v59, 0.0 }
  0xf3   : > { %v299_v5 = vadd.f32 %v298_v2, %v213_v32  ;;  %v328_v10 = vadd.f32 %v327_v7, %v213_v32  ;;  %v1098_v11 = vpop.f32.mrb[6].mxu1  ;;  %v346_v12 = vmax.f32 %v296_v62, 0.0 }
  0xf4   : > { %v349_v9 = vmax.f32 %v307_v1, 0.0  ;;  %v356_v14 = vmax.f32 %v336_v6, 0.0  ;;  %v339_v15 = vadd.f32 %v1098_v11, %v213_v32  ;;  %v330_v16 = vpop.f32.mrb[7].mxu1 }
  0xf5   : > { %v347_v13 = vmax.f32 %v299_v5, 0.0  ;;  %v354_v18 = vmax.f32 %v328_v10, 0.0  ;;  %v331_v19 = vadd.f32 %v330_v16, %v213_v32 }
  0xf6   : > { %v361_v17 = vpack.c.bf16 %v349_v9, %v348_v8  ;;  %v357_v21 = vmax.f32 %v339_v15, 0.0 }
  0xf7   : > { %v360_v20 = vpack.c.bf16 %v347_v13, %v346_v12  ;;  %v355_v22 = vmax.f32 %v331_v19, 0.0 }
  0xf8   : > { %v365_v23 = vpack.c.bf16 %v357_v21, %v356_v14 }
  0xf9   : > { %1107 = vmatprep.mubr.msk.bf16.mxu1 %vm382_vm1, %v360_v20  ;;  %v364_v24 = vpack.c.bf16 %v355_v22, %v354_v18 }
  0xfa   : > { %1108 = vmatmul.mubr.msk.bf16.gmra.mrb[12].mxu1 %vm382_vm1, %v361_v17 }
  0xfb   : > { %1111 = vmatprep.mubr.msk.bf16.mxu1 %vm382_vm1, %v362_v3 }
 0x102   : > { %1112 = vmatmul.mubr.msk.bf16.gmra.mrb[16].mxu1 %vm382_vm1, %v363_v0 }
 0x103   : > { %1115 = vmatprep.mubr.msk.bf16.mxu1 %vm382_vm1, %v364_v24 }
 0x10a   : > { %1116 = vmatmul.mubr.msk.bf16.gmra.mrb[20].mxu1 %vm382_vm1, %v365_v23  ;;  %v530_v23 = vsub.s32 2, %v1283_v29 }
 0x10c   : > { %v1315_v24 = vrot.slane %v1289_v31, %v530_v23 }
 0x1c5   : > { %v1105_v30 = vpop.f32.mrb[8].mxu1 }
 0x1c6   : > { %v450_v32 = vadd.f32 %v1105_v30, %v369_v27  ;;  %v441_v33 = vpop.f32.mrb[9].mxu1 }
 0x1c7   : > { %v442_v34 = vadd.f32 %v441_v33, %v369_v27  ;;  %v1106_v35 = vpop.f32.mrb[10].mxu1 }
 0x1c8   : > { %v453_v36 = vadd.f32 %v1106_v35, %v369_v27  ;;  %v444_v37 = vpop.f32.mrb[11].mxu1  ;;  %v506_v39 = vmax.f32 %v450_v32, 0.0 }
 0x1c9   : > { %v445_v38 = vadd.f32 %v444_v37, %v369_v27  ;;  %v504_v41 = vmax.f32 %v442_v34, 0.0 }
 0x1ca   : > { %v507_v40 = vmax.f32 %v453_v36, 0.0 }
 0x1cb   : > { %v505_v42 = vmax.f32 %v445_v38, 0.0 }
 0x1cc   : > { %v521_v43 = vpack.c.bf16 %v507_v40, %v506_v39 }
 0x1cd   : > { %v520_v44 = vpack.c.bf16 %v505_v42, %v504_v41  ;;  %v1109_v45 = vpop.f32.mrb[12].mxu1 }
 0x1ce   : > { %v466_v46 = vadd.f32 %v1109_v45, %v369_v27  ;;  %v457_v47 = vpop.f32.mrb[13].mxu1 }
 0x1cf   : > { %v458_v48 = vadd.f32 %v457_v47, %v369_v27  ;;  %v1110_v49 = vpop.f32.mrb[14].mxu1  ;;  %1123 = vmatprep.mubr.msk.bf16.mxu0 %vm382_vm1, %v520_v44 }
 0x1d0   : > { %v469_v50 = vadd.f32 %v1110_v49, %v369_v27  ;;  %v460_v51 = vpop.f32.mrb[15].mxu1  ;;  %1124 = vmatmul.mubr.msk.bf16.vlgmr.msra.gmra.mrb[8].mxu0 %vm382_vm1, %v521_v43  ;;  %v510_v53 = vmax.f32 %v466_v46, 0.0 }
 0x1d1   : > { %v461_v52 = vadd.f32 %v460_v51, %v369_v27  ;;  %v508_v55 = vmax.f32 %v458_v48, 0.0 }
 0x1d2   : > { %v511_v54 = vmax.f32 %v469_v50, 0.0 }
 0x1d3   : > { %v509_v56 = vmax.f32 %v461_v52, 0.0 }
 0x1d4   : > { %v523_v57 = vpack.c.bf16 %v511_v54, %v510_v53 }
 0x1d5   : > { %v522_v58 = vpack.c.bf16 %v509_v56, %v508_v55  ;;  %v1113_v59 = vpop.f32.mrb[16].mxu1 }
 0x1d6   : > { %v482_v60 = vadd.f32 %v1113_v59, %v369_v27  ;;  %v473_v61 = vpop.f32.mrb[17].mxu1 }
 0x1d7   : > { %v474_v62 = vadd.f32 %v473_v61, %v369_v27  ;;  %v1114_v63 = vpop.f32.mrb[18].mxu1  ;;  %1127 = vmatprep.mubr.msk.bf16.mxu0 %vm382_vm1, %v522_v58 }
 0x1d8   : > { %v485_v0 = vadd.f32 %v1114_v63, %v369_v27  ;;  %v476_v1 = vpop.f32.mrb[19].mxu1  ;;  %1128 = vmatmul.mubr.msk.bf16.gmra.mrb[12].mxu0 %vm382_vm1, %v523_v57  ;;  %v514_v3 = vmax.f32 %v482_v60, 0.0 }
 0x1d9   : > { %v477_v2 = vadd.f32 %v476_v1, %v369_v27  ;;  %v512_v5 = vmax.f32 %v474_v62, 0.0 }
 0x1da   : > { %v515_v4 = vmax.f32 %v485_v0, 0.0 }
 0x1db   : > { %v513_v6 = vmax.f32 %v477_v2, 0.0 }
 0x1dc   : > { %v525_v7 = vpack.c.bf16 %v515_v4, %v514_v3  ;;  %v1353_v4 = vand.u32 127, %v210_v28 }
 0x1dd   : > { %v524_v8 = vpack.c.bf16 %v513_v6, %v512_v5  ;;  %v1117_v9 = vpop.f32.mrb[20].mxu1 }
 0x1de   : > { %v498_v10 = vadd.f32 %v1117_v9, %v369_v27  ;;  %v489_v11 = vpop.f32.mrb[21].mxu1  ;;  %vm667_vm4 = vcmp.ge.s32.totalorder %v1353_v4, 8 }
 0x1df   : > { %v490_v12 = vadd.f32 %v489_v11, %v369_v27  ;;  %v1118_v13 = vpop.f32.mrb[22].mxu1  ;;  %1131 = vmatprep.mubr.msk.bf16.mxu0 %vm382_vm1, %v524_v8 }
 0x1e0   : > { %v501_v14 = vadd.f32 %v1118_v13, %v369_v27  ;;  %v492_v15 = vpop.f32.mrb[23].mxu1  ;;  %1132 = vmatmul.mubr.msk.bf16.gmra.mrb[16].mxu0 %vm382_vm1, %v525_v7  ;;  %v518_v17 = vmax.f32 %v498_v10, 0.0 }
 0x1e1   : > { %v493_v16 = vadd.f32 %v492_v15, %v369_v27  ;;  %v516_v19 = vmax.f32 %v490_v12, 0.0 }
 0x1e2   : > { %v519_v18 = vmax.f32 %v501_v14, 0.0 }
 0x1e3   : > { %v517_v20 = vmax.f32 %v493_v16, 0.0 }
 0x1e4   : > { %v527_v21 = vpack.c.bf16 %v519_v18, %v518_v17 }
 0x1e5   : > { %v526_v22 = vpack.c.bf16 %v517_v20, %v516_v19 }
 0x1e7   : > { %1135 = vmatprep.mubr.msk.bf16.mxu0 %vm382_vm1, %v526_v22 }
 0x1e8   : > { %1136 = vmatmul.mubr.msk.bf16.gmra.mrb[20].mxu0 %vm382_vm1, %v527_v21 }
 0x2a3   : > { %v1125_v25 = vpop.f32.mrb[8].mxu0 }
 0x2a4   : > { %v1318_v26 = vadd.f32 %v1125_v25, %v1315_v24  ;;  %v602_v27 = vpop.f32.mrb[9].mxu0 }
 0x2a5   : > { %v1321_v30 = vadd.f32 %v602_v27, %v1315_v24  ;;  %v1126_v32 = vpop.f32.mrb[10].mxu0 }
 0x2a6   : > { %v686_v33 = vand.u32 2147483647, %v1318_v26  ;;  %v1325_v34 = vadd.f32 %v1126_v32, %v1315_v24  ;;  %v605_v35 = vpop.f32.mrb[11].mxu0  ;;  %v670_v8 = vmax.f32 %v1318_v26, 0.0 }
 0x2a7   : > { %v684_v29 = vand.u32 2147483647, %v1321_v30  ;;  %v1329_v31 = vadd.f32 %v605_v35, %v1315_v24  ;;  %v668_v9 = vmax.f32 %v1321_v30, 0.0 }
 0x2a8   : > { %v702_v36 = vsub.f32 0.0, %v686_v33  ;;  %v687_v37 = vand.u32 2147483647, %v1325_v34  ;;  %v671_v15 = vmax.f32 %v1325_v34, 0.0 }
 0x2a9   : > { %v700_v38 = vsub.f32 0.0, %v684_v29  ;;  %v685_v39 = vand.u32 2147483647, %v1329_v31  ;;  %v669_v18 = vmax.f32 %v1329_v31, 0.0 }
 0x2aa   : > { %v720_v40 = vmul.f32 1.442695, %v702_v36  ;;  %v703_v41 = vsub.f32 0.0, %v687_v37 }
 0x2ab   : > { %v716_v42 = vmul.f32 1.442695, %v700_v38  ;;  %v701_v43 = vsub.f32 0.0, %v685_v39  ;;  %v1129_v44 = vpop.f32.mrb[12].mxu0 }
 0x2ac   : > { %1154 = vpow2.f32 %v720_v40  ;;  %v722_v45 = vmul.f32 1.442695, %v703_v41  ;;  %v1334_v46 = vadd.f32 %v1129_v44, %v1315_v24  ;;  %v618_v47 = vpop.f32.mrb[13].mxu0 }
 0x2ad   : > { %1156 = vpow2.f32 %v716_v42  ;;  %v718_v48 = vmul.f32 1.442695, %v701_v43  ;;  %v1337_v49 = vadd.f32 %v618_v47, %v1315_v24  ;;  %v1130_v50 = vpop.f32.mrb[14].mxu0 }
 0x2ae   : > { %1158 = vpow2.f32 %v722_v45  ;;  %v690_v51 = vand.u32 2147483647, %v1334_v46  ;;  %v1341_v52 = vadd.f32 %v1130_v50, %v1315_v24  ;;  %v621_v53 = vpop.f32.mrb[15].mxu0  ;;  %v674_v19 = vmax.f32 %v1334_v46, 0.0 }
 0x2af   : > { %1160 = vpow2.f32 %v718_v48  ;;  %v688_v54 = vand.u32 2147483647, %v1337_v49  ;;  %v1345_v55 = vadd.f32 %v621_v53, %v1315_v24  ;;  %v672_v29 = vmax.f32 %v1337_v49, 0.0 }
 0x2b0   : > { %v706_v56 = vsub.f32 0.0, %v690_v51  ;;  %v691_v57 = vand.u32 2147483647, %v1341_v52  ;;  %v675_v38 = vmax.f32 %v1341_v52, 0.0 }
 0x2b1   : > { %v704_v58 = vsub.f32 0.0, %v688_v54  ;;  %v689_v59 = vand.u32 2147483647, %v1345_v55  ;;  %v673_v39 = vmax.f32 %v1345_v55, 0.0 }
 0x2b2   : > { %v728_v60 = vmul.f32 1.442695, %v706_v56  ;;  %v707_v61 = vsub.f32 0.0, %v691_v57 }
 0x2b3   : > { %v724_v62 = vmul.f32 1.442695, %v704_v58  ;;  %v705_v63 = vsub.f32 0.0, %v689_v59  ;;  %v1133_v0 = vpop.f32.mrb[16].mxu0 }
 0x2b4   : > { %1162 = vpow2.f32 %v728_v60  ;;  %v730_v1 = vmul.f32 1.442695, %v707_v61  ;;  %v1350_v2 = vadd.f32 %v1133_v0, %v1315_v24  ;;  %v634_v3 = vpop.f32.mrb[17].mxu0 }
 0x2b5   : > { %1164 = vpow2.f32 %v724_v62  ;;  %v726_v5 = vmul.f32 1.442695, %v705_v63  ;;  %v1134_v6 = vpop.f32.mrb[18].mxu0  ;;  %v1369_v40 = vadd.f32 %v634_v3, %v1315_v24 }
 0x2b6   : > { %v1155_v7 = vpop.eup %1154  ;;  %1166 = vpow2.f32 %v730_v1  ;;  %v694_v10 = vand.u32 2147483647, %v1350_v2  ;;  %v1358_v11 = vpop.f32.mrb[19].mxu0  ;;  %v1374_v44 = vadd.f32 %v1134_v6, %v1315_v24 }
 0x2b7   : > { %v1157_v12 = vpop.eup %1156  ;;  %v766_v13 = vadd.f32 1.0, %v1155_v7  ;;  %v769_v14 = vmul.f32 -0.5, %v1155_v7  ;;  %1168 = vpow2.f32 %v726_v5  ;;  %v772_v21 = vand.u32 2147483647, %v1155_v7 }
 0x2b8   : > { %v1159_v28 = vpop.eup %1158  ;;  %v748_v16 = vadd.f32 1.0, %v1157_v12  ;;  %v751_v17 = vmul.f32 -0.5, %v1157_v12  ;;  %v710_v23 = vsub.f32 0.0, %v694_v10  ;;  %v754_v32 = vand.u32 2147483647, %v1157_v12 }
 0x2b9   : > { %v1161_v20 = vpop.eup %1160  ;;  %1170 = vlog2.f32 %v766_v13  ;;  %v775_v22 = vadd.f32 1.0, %v1159_v28  ;;  %v770_v25 = vadd.f32 1.0, %v769_v14  ;;  %v778_v33 = vmul.f32 -0.5, %v1159_v28 }
 0x2ba   : > { %1172 = vlog2.f32 %v748_v16  ;;  %v752_v27 = vadd.f32 1.0, %v751_v17  ;;  %v757_v35 = vadd.f32 1.0, %v1161_v20  ;;  %v760_v37 = vmul.f32 -0.5, %v1161_v20 }
 0x2bb   : > { %1174 = vlog2.f32 %v775_v22  ;;  %v1364_v36 = vpop.f32.mrb[20].mxu0  ;;  %v781_v42 = vand.u32 2147483647, %v1159_v28  ;;  %v736_v43 = vmul.f32 1.442695, %v710_v23  ;;  %v771_v48 = vmul.f32 %v1155_v7, %v770_v25 }
 0x2bc   : > { %v1371_v41 = vpop.f32.mrb[21].mxu0  ;;  %1176 = vlog2.f32 %v757_v35  ;;  %vm1378_vm2 = vcmp.lt.f32.partialorder %v772_v21, 0.0004427343  ;;  %v753_v51 = vmul.f32 %v1157_v12, %v752_v27  ;;  %vm1382_vm3 = vcmp.lt.f32.partialorder %v754_v32, 0.0004427343 }
 0x2bd   : > { %v1376_v45 = vpop.f32.mrb[22].mxu0  ;;  %v779_v57 = vadd.f32 1.0, %v778_v33  ;;  %1178 = vpow2.f32 %v736_v43  ;;  %v761_v61 = vadd.f32 1.0, %v760_v37  ;;  %v763_v62 = vand.u32 2147483647, %v1161_v20 }
 0x2be   : > { %v1163_v47 = vpop.eup %1162  ;;  %v1386_v54 = vpop.f32.mrb[23].mxu0  ;;  %vm1391_vm5 = vcmp.lt.f32.partialorder %v781_v42, 0.0004427343  ;;  %v692_v17 = vand.u32 2147483647, %v1369_v40 }
 0x2bf   : > { %v1165_v56 = vpop.eup %1164  ;;  %v802_v58 = vadd.f32 1.0, %v1163_v47  ;;  %v805_v59 = vmul.f32 -0.5, %v1163_v47  ;;  %v808_v5 = vand.u32 2147483647, %v1163_v47  ;;  %v780_v23 = vmul.f32 %v1159_v28, %v779_v57 }
 0x2c0   : > { %v1167_v60 = vpop.eup %1166  ;;  %v784_v63 = vadd.f32 1.0, %v1165_v56  ;;  %v787_v0 = vmul.f32 -0.5, %v1165_v56  ;;  %v790_v12 = vand.u32 2147483647, %v1165_v56  ;;  %v762_v25 = vmul.f32 %v1161_v20, %v761_v61 }
 0x2c1   : > { %v1389_v1 = vpop.eup %1168  ;;  %1180 = vlog2.f32 %v802_v58  ;;  %v811_v6 = vadd.f32 1.0, %v1167_v60  ;;  %v806_v7 = vadd.f32 1.0, %v805_v59  ;;  %v814_v14 = vmul.f32 -0.5, %v1167_v60 }
 0x2c2   : > { %1182 = vlog2.f32 %v784_v63  ;;  %v788_v10 = vadd.f32 1.0, %v787_v0  ;;  %v793_v16 = vadd.f32 1.0, %v1389_v1  ;;  %vm1397_vm6 = vcmp.lt.f32.partialorder %v763_v62, 0.0004427343 }
 0x2c3   : > { %v1171_v13 = vpop.eup %1170  ;;  %1184 = vlog2.f32 %v811_v6  ;;  %vm1401_vm7 = vcmp.lt.f32.partialorder %v808_v5, 0.0004427343  ;;  %v817_v37 = vand.u32 2147483647, %v1167_v60  ;;  %v796_v42 = vmul.f32 -0.5, %v1389_v1 }
 0x2c4   : > { %v1173_v21 = vpop.eup %1172  ;;  %v768_v22 = vmul.f32 0.6931472, %v1171_v13  ;;  %1186 = vlog2.f32 %v793_v16  ;;  %v807_v20 = vmul.f32 %v1163_v47, %v806_v7  ;;  %v789_v57 = vmul.f32 %v1165_v56, %v788_v10 }
 0x2c5   : > { %v1175_v32 = vpop.eup %1174  ;;  %v750_v33 = vmul.f32 0.6931472, %v1173_v21  ;;  %vm1408_vm8 = vcmp.lt.f32.partialorder %v790_v12, 0.0004427343  ;;  %v815_v63 = vadd.f32 1.0, %v814_v14  ;;  %v708_v0 = vsub.f32 0.0, %v692_v17 }
 0x2c6   : > { %v774_v43 = vsel %vm1378_vm2, %v771_v48, %v768_v22  ;;  %v777_v28 = vmul.f32 0.6931472, %v1175_v32  ;;  %v1177_v59 = vpop.eup %1176  ;;  %v799_v56 = vand.u32 2147483647, %v1389_v1  ;;  %vm1432_vm9 = vcmp.lt.f32.partialorder %v817_v37, 0.0004427343 }
 0x2c7   : > { %v894_v61 = vadd.f32 %v774_v43, %v670_v8  ;;  %v756_v62 = vsel %vm1382_vm3, %v753_v51, %v750_v33  ;;  %v759_v48 = vmul.f32 0.6931472, %v1177_v59  ;;  %v1421_v5 = vpop.eup %1178  ;;  %v797_v53 = vadd.f32 1.0, %v796_v42 }
 0x2c8   : > { %v892_v50 = vadd.f32 %v756_v62, %v668_v9  ;;  %v783_v47 = vsel %vm1391_vm5, %v780_v23, %v777_v28  ;;  %v838_v7 = vadd.f32 1.0, %v1421_v5  ;;  %v732_v10 = vmul.f32 1.442695, %v708_v0 }
 0x2c9   : > { %v910_v8 = vadd.f32 0.01, %v894_v61  ;;  %v895_v51 = vadd.f32 %v783_v47, %v671_v15  ;;  %v765_v6 = vsel %vm1397_vm6, %v762_v25, %v759_v48  ;;  %v816_v16 = vmul.f32 %v1167_v60, %v815_v63 }
 0x2ca   : > { %v908_v3 = vadd.f32 0.01, %v892_v50  ;;  %v893_v14 = vadd.f32 %v765_v6, %v669_v18  ;;  %vm1448_vm10 = vcmp.lt.f32.partialorder %v799_v56, 0.0004427343  ;;  %1188 = vlog2.f32 %v838_v7 }
 0x2cb   : > { %v1181_v12 = vpop.eup %1180  ;;  %v926_v13 = vsel %vm667_vm4, %v910_v8, %v1318_v26  ;;  %v911_v15 = vadd.f32 0.01, %v895_v51  ;;  %v798_v27 = vmul.f32 %v1389_v1, %v797_v53  ;;  %v841_v33 = vmul.f32 -0.5, %v1421_v5 }
 0x2cc   : > { %v1183_v17 = vpop.eup %1182  ;;  %942 = vst [vmem:[%s1428_s6 + $0x10] sm:$0xff] %v926_v13  ;;  %v924_v21 = vsel %vm667_vm4, %v908_v3, %v1321_v30  ;;  %v804_v22 = vmul.f32 0.6931472, %v1181_v12  ;;  %v909_v18 = vadd.f32 0.01, %v893_v14  ;;  %1190 = vpow2.f32 %v732_v10 }
 0x2cd   : > { %v1185_v25 = vpop.eup %1184  ;;  %940 = vst [vmem:[%s1428_s6] sm:$0xff] %v924_v21  ;;  %v927_v26 = vsel %vm667_vm4, %v911_v15, %v1325_v34  ;;  %v786_v60 = vmul.f32 0.6931472, %v1183_v17  ;;  %v695_v1 = vand.u32 2147483647, %v1374_v44  ;;  %v1482_v58 = vadd.f32 %v1364_v36, %v1315_v24 }
 0x2ce   : > { %943 = vst [vmem:[%s1428_s6 + $0x18] sm:$0xff] %v927_v26  ;;  %v810_v30 = vsel %vm1401_vm7, %v807_v20, %v804_v22  ;;  %v813_v32 = vmul.f32 0.6931472, %v1185_v25  ;;  %v1187_v37 = vpop.eup %1186  ;;  %v925_v42 = vsel %vm667_vm4, %v909_v18, %v1329_v31  ;;  %v1476_v31 = vadd.f32 %v1358_v11, %v1315_v24 }
 0x2cf   : > { %v898_v34 = vadd.f32 %v810_v30, %v674_v19  ;;  %v792_v43 = vsel %vm1408_vm8, %v789_v57, %v786_v60  ;;  %941 = vst [vmem:[%s1428_s6 + $0x8] sm:$0xff] %v925_v42  ;;  %v795_v20 = vmul.f32 0.6931472, %v1187_v37  ;;  %v711_v57 = vsub.f32 0.0, %v695_v1 }
 0x2d0   : > { %v896_v35 = vadd.f32 %v792_v43, %v672_v29  ;;  %v819_v28 = vsel %vm1432_vm9, %v816_v16, %v813_v32  ;;  %v842_v62 = vadd.f32 1.0, %v841_v33  ;;  %v693_v63 = vand.u32 2147483647, %v1476_v31 }
 0x2d1   : > { %v914_v59 = vadd.f32 0.01, %v898_v34  ;;  %v899_v19 = vadd.f32 %v819_v28, %v675_v38  ;;  %v801_v61 = vsel %vm1448_vm10, %v798_v27, %v795_v20  ;;  %v738_v50 = vmul.f32 1.442695, %v711_v57 }
 0x2d2   : > { %v912_v29 = vadd.f32 0.01, %v896_v35  ;;  %v897_v38 = vadd.f32 %v801_v61, %v673_v39  ;;  %v844_v47 = vand.u32 2147483647, %v1421_v5  ;;  %v709_v48 = vsub.f32 0.0, %v693_v63 }
 0x2d3   : > { %v930_v11 = vsel %vm667_vm4, %v914_v59, %v1334_v46  ;;  %v915_v0 = vadd.f32 0.01, %v899_v19  ;;  %v698_v56 = vand.u32 2147483647, %v1482_v58  ;;  %1192 = vpow2.f32 %v738_v50 }
 0x2d4   : > { %946 = vst [vmem:[%s1428_s6 + $0x30] sm:$0xff] %v930_v11  ;;  %v928_v36 = vsel %vm667_vm4, %v912_v29, %v1337_v49  ;;  %v913_v8 = vadd.f32 0.01, %v897_v38  ;;  %v1504_v39 = vadd.f32 %v1371_v41, %v1315_v24  ;;  %v1189_v51 = vpop.eup %1188  ;;  %v678_v49 = vmax.f32 %v1350_v2, 0.0 }
 0x2d5   : > { %944 = vst [vmem:[%s1428_s6 + $0x20] sm:$0xff] %v928_v36  ;;  %v931_v46 = vsel %vm667_vm4, %v915_v0, %v1341_v52  ;;  %v734_v9 = vmul.f32 1.442695, %v709_v48  ;;  %v714_v53 = vsub.f32 0.0, %v698_v56  ;;  %v1510_v3 = vadd.f32 %v1376_v45, %v1315_v24 }
 0x2d6   : > { %947 = vst [vmem:[%s1428_s6 + $0x38] sm:$0xff] %v931_v46  ;;  %v929_v52 = vsel %vm667_vm4, %v913_v8, %v1345_v55  ;;  %v840_v6 = vmul.f32 0.6931472, %v1189_v51  ;;  %v843_v7 = vmul.f32 %v1421_v5, %v842_v62  ;;  %v696_v41 = vand.u32 2147483647, %v1504_v39  ;;  %v1191_v10 = vpop.eup %1190 }
 0x2d7   : > { %945 = vst [vmem:[%s1428_s6 + $0x28] sm:$0xff] %v929_v52  ;;  %vm845_vm11 = vcmp.lt.f32.partialorder %v844_v47, 0.0004427343  ;;  %1194 = vpow2.f32 %v734_v9  ;;  %v744_v12 = vmul.f32 1.442695, %v714_v53  ;;  %v820_v45 = vadd.f32 1.0, %v1191_v10 }
 0x2d8   : > { %v699_v13 = vand.u32 2147483647, %v1510_v3  ;;  %v846_v15 = vsel %vm845_vm11, %v843_v7, %v840_v6  ;;  %v1521_v14 = vadd.f32 %v1386_v54, %v1315_v24  ;;  %v712_v16 = vsub.f32 0.0, %v696_v41 }
 0x2d9   : > { %v902_v55 = vadd.f32 %v846_v15, %v678_v49  ;;  %1196 = vpow2.f32 %v744_v12  ;;  %v823_v26 = vmul.f32 -0.5, %v1191_v10  ;;  %v826_v32 = vand.u32 2147483647, %v1191_v10 }
 0x2da   : > { %v715_v5 = vsub.f32 0.0, %v699_v13  ;;  %1198 = vlog2.f32 %v820_v45  ;;  %v740_v21 = vmul.f32 1.442695, %v712_v16  ;;  %v697_v23 = vand.u32 2147483647, %v1521_v14 }
 0x2db   : > { %v918_v17 = vadd.f32 0.01, %v902_v55  ;;  %v824_v30 = vadd.f32 1.0, %v823_v26  ;;  %v676_v35 = vmax.f32 %v1369_v40, 0.0  ;;  %vm827_vm12 = vcmp.lt.f32.partialorder %v826_v32, 0.0004427343 }
 0x2dc   : > { %v746_v22 = vmul.f32 1.442695, %v715_v5  ;;  %1200 = vpow2.f32 %v740_v21  ;;  %v713_v24 = vsub.f32 0.0, %v697_v23  ;;  %v679_v49 = vmax.f32 %v1374_v44, 0.0 }
 0x2dd   : > { %v934_v25 = vsel %vm667_vm4, %v918_v17, %v1350_v2  ;;  %v1193_v18 = vpop.eup %1192  ;;  %v825_v1 = vmul.f32 %v1191_v10, %v824_v30  ;;  %v677_v7 = vmax.f32 %v1476_v31, 0.0  ;;  %v682_v23 = vmax.f32 %v1482_v58, 0.0 }
 0x2de   : > { %950 = vst [vmem:[%s1428_s6 + $0x50] sm:$0xff] %v934_v25  ;;  %1202 = vpow2.f32 %v746_v22  ;;  %v847_v54 = vadd.f32 1.0, %v1193_v18  ;;  %v742_v60 = vmul.f32 1.442695, %v713_v24  ;;  %v850_v42 = vmul.f32 -0.5, %v1193_v18 }
 0x2df   : > { %v853_v63 = vand.u32 2147483647, %v1193_v18  ;;  %v680_v30 = vmax.f32 %v1504_v39, 0.0 }
 0x2e0   : > { %1204 = vlog2.f32 %v847_v54  ;;  %v851_v59 = vadd.f32 1.0, %v850_v42 }
 0x2e1   : > { %v1195_v27 = vpop.eup %1194  ;;  %1206 = vpow2.f32 %v742_v60  ;;  %vm854_vm13 = vcmp.lt.f32.partialorder %v853_v63, 0.0004427343 }
 0x2e2   : > { %v829_v33 = vadd.f32 1.0, %v1195_v27  ;;  %v832_v19 = vmul.f32 -0.5, %v1195_v27  ;;  %v852_v50 = vmul.f32 %v1193_v18, %v851_v59  ;;  %v835_v47 = vand.u32 2147483647, %v1195_v27 }
 0x2e3   : > { %v1197_v37 = vpop.eup %1196 }
 0x2e4   : > { %v1199_v34 = vpop.eup %1198  ;;  %1208 = vlog2.f32 %v829_v33  ;;  %v874_v43 = vadd.f32 1.0, %v1197_v37  ;;  %v877_v61 = vmul.f32 -0.5, %v1197_v37  ;;  %v833_v36 = vadd.f32 1.0, %v832_v19 }
 0x2e5   : > { %v822_v2 = vmul.f32 0.6931472, %v1199_v34  ;;  %v880_v41 = vand.u32 2147483647, %v1197_v37  ;;  %vm836_vm14 = vcmp.lt.f32.partialorder %v835_v47, 0.0004427343 }
 0x2e6   : > { %1210 = vlog2.f32 %v874_v43  ;;  %v1201_v28 = vpop.eup %1200  ;;  %v878_v8 = vadd.f32 1.0, %v877_v61  ;;  %v834_v13 = vmul.f32 %v1195_v27, %v833_v36 }
 0x2e7   : > { %v828_v20 = vsel %vm827_vm12, %v825_v1, %v822_v2  ;;  %v856_v62 = vadd.f32 1.0, %v1201_v28  ;;  %v859_v51 = vmul.f32 -0.5, %v1201_v28  ;;  %v862_v55 = vand.u32 2147483647, %v1201_v28 }
 0x2e8   : > { %v1529_v57 = vpop.eup %1202  ;;  %v900_v29 = vadd.f32 %v828_v20, %v676_v35  ;;  %v879_v15 = vmul.f32 %v1197_v37, %v878_v8  ;;  %vm881_vm15 = vcmp.lt.f32.partialorder %v880_v41, 0.0004427343  ;;  %v683_v35 = vmax.f32 %v1510_v3, 0.0 }
 0x2e9   : > { %v883_v11 = vadd.f32 1.0, %v1529_v57  ;;  %1212 = vlog2.f32 %v856_v62  ;;  %v886_v9 = vmul.f32 -0.5, %v1529_v57  ;;  %v860_v45 = vadd.f32 1.0, %v859_v51 }
 0x2ea   : > { %v916_v0 = vadd.f32 0.01, %v900_v29  ;;  %v1205_v38 = vpop.eup %1204  ;;  %v889_v24 = vand.u32 2147483647, %v1529_v57  ;;  %vm863_vm0 = vcmp.lt.f32.partialorder %v862_v55, 0.0004427343 }
 0x2eb   : > { %1214 = vlog2.f32 %v883_v11  ;;  %v1532_v48 = vpop.eup %1206  ;;  %v849_v46 = vmul.f32 0.6931472, %v1205_v38  ;;  %v887_v21 = vadd.f32 1.0, %v886_v9  ;;  %v861_v37 = vmul.f32 %v1201_v28, %v860_v45 }
 0x2ec   : > { %v932_v56 = vsel %vm667_vm4, %v916_v0, %v1369_v40  ;;  %v865_v53 = vadd.f32 1.0, %v1532_v48  ;;  %v868_v25 = vmul.f32 -0.5, %v1532_v48  ;;  %vm890_vm1 = vcmp.lt.f32.partialorder %v889_v24, 0.0004427343 }
 0x2ed   : > { %948 = vst [vmem:[%s1428_s6 + $0x40] sm:$0xff] %v932_v56  ;;  %v855_v6 = vsel %vm854_vm13, %v852_v50, %v849_v46  ;;  %v888_v42 = vmul.f32 %v1529_v57, %v887_v21  ;;  %v871_v20 = vand.u32 2147483647, %v1532_v48  ;;  %v681_v11 = vmax.f32 %v1521_v14, 0.0 }
 0x2ee   : > { %v1209_v52 = vpop.eup %1208  ;;  %v903_v10 = vadd.f32 %v855_v6, %v679_v49  ;;  %1216 = vlog2.f32 %v865_v53  ;;  %v869_v2 = vadd.f32 1.0, %v868_v25 }
 0x2ef   : > { %v831_v12 = vmul.f32 0.6931472, %v1209_v52  ;;  %vm872_vm2 = vcmp.lt.f32.partialorder %v871_v20, 0.0004427343 }
 0x2f0   : > { %v1211_v40 = vpop.eup %1210  ;;  %v919_v16 = vadd.f32 0.01, %v903_v10  ;;  %v870_v62 = vmul.f32 %v1532_v48, %v869_v2 }
 0x2f1   : > { %v837_v5 = vsel %vm836_vm14, %v834_v13, %v831_v12  ;;  %v876_v17 = vmul.f32 0.6931472, %v1211_v40 }
 0x2f2   : > { %v901_v22 = vadd.f32 %v837_v5, %v677_v7  ;;  %v935_v26 = vsel %vm667_vm4, %v919_v16, %v1374_v44 }
 0x2f3   : > { %v882_v18 = vsel %vm881_vm15, %v879_v15, %v876_v17  ;;  %v1213_v54 = vpop.eup %1212  ;;  %951 = vst [vmem:[%s1428_s6 + $0x58] sm:$0xff] %v935_v26 }
 0x2f4   : > { %v917_v60 = vadd.f32 0.01, %v901_v22  ;;  %v906_v27 = vadd.f32 %v882_v18, %v682_v23  ;;  %v858_v33 = vmul.f32 0.6931472, %v1213_v54 }
 0x2f5   : > { %v1215_v32 = vpop.eup %1214 }
 0x2f6   : > { %v933_v44 = vsel %vm667_vm4, %v917_v60, %v1476_v31  ;;  %v922_v34 = vadd.f32 0.01, %v906_v27  ;;  %v885_v43 = vmul.f32 0.6931472, %v1215_v32  ;;  %v864_v1 = vsel %vm863_vm0, %v861_v37, %v858_v33 }
 0x2f7   : > { %949 = vst [vmem:[%s1428_s6 + $0x48] sm:$0xff] %v933_v44  ;;  %v904_v59 = vadd.f32 %v864_v1, %v680_v30 }
 0x2f8   : > { %v938_v28 = vsel %vm667_vm4, %v922_v34, %v1482_v58  ;;  %v891_v19 = vsel %vm890_vm1, %v888_v42, %v885_v43  ;;  %v1217_v57 = vpop.eup %1216 }
 0x2f9   : > { %954 = vst [vmem:[%s1428_s6 + $0x70] sm:$0xff] %v938_v28  ;;  %v907_v31 = vadd.f32 %v891_v19, %v683_v35  ;;  %v920_v29 = vadd.f32 0.01, %v904_v59  ;;  %v867_v61 = vmul.f32 0.6931472, %v1217_v57 }
 0x2fb   : > { %v923_v63 = vadd.f32 0.01, %v907_v31  ;;  %v936_v0 = vsel %vm667_vm4, %v920_v29, %v1504_v39  ;;  %v873_v58 = vsel %vm872_vm2, %v870_v62, %v867_v61 }
 0x2fc   : > { %952 = vst [vmem:[%s1428_s6 + $0x60] sm:$0xff] %v936_v0  ;;  %v905_v50 = vadd.f32 %v873_v58, %v681_v11 }
 0x2fd   : > { %v939_v38 = vsel %vm667_vm4, %v923_v63, %v1510_v3 }
 0x2fe   : > { %955 = vst [vmem:[%s1428_s6 + $0x78] sm:$0xff] %v939_v38  ;;  %v921_v36 = vadd.f32 0.01, %v905_v50 }
 0x300   : > { %v937_v47 = vsel %vm667_vm4, %v921_v36, %v1521_v14 }
 0x301   : > { %953 = vst [vmem:[%s1428_s6 + $0x68] sm:$0xff] %v937_v47 }
 0x302 PF: > { %s13_s12 = sadd.s32 1, %s1224_s12  }
 0x303   : > { %p10_p4 = scmp.ge.s32.totalorder %s13_s12, 4  }
 0x305   :  { %12 = sbr.rel (!%p10_p4) target bundleno = 1 (0x1), region = 62 }

</bundles_post_ra>
